<compile_context>
chip_gen: v5e
topology: v5e:2x2
jax: 0.10.0
libtpu: 0.0.40
codegen_flags: <defaults>
</compile_context>

<pallas_src>
import jax
import jax.numpy as jnp
from jax.experimental import pallas as pl
from jax.experimental.pallas import tpu as pltpu


def _round_up(x, m):
    return ((x + m - 1) // m) * m


# ----------------------------------------------------------------------------
# One-time probe of pltpu.roll direction (guards the prefix-sum correctness
# against any ambiguity in rotate semantics; runs a trivial 1-vreg kernel).
# ----------------------------------------------------------------------------
_ROLL_FORWARD = None


def _roll_is_forward():
    global _ROLL_FORWARD
    if _ROLL_FORWARD is None:
        def probe(x_ref, o_ref):
            o_ref[...] = pltpu.roll(x_ref[...], 1, axis=0)

        x = (jnp.arange(8, dtype=jnp.float32)[:, None]
             * jnp.ones((1, 128), jnp.float32))            # row i == i
        y = pl.pallas_call(
            probe, out_shape=jax.ShapeDtypeStruct((8, 128), jnp.float32))(x)
        # forward (jnp.roll-like): y[1] == x[0]
        _ROLL_FORWARD = bool(y[1, 0] == x[0, 0])
    return _ROLL_FORWARD


# ----------------------------------------------------------------------------
# Pallas kernel
# ----------------------------------------------------------------------------
def _make_rri_kernel(radius, nsample, n_points, n_chan, p_tile, sel_group,
                     roll_forward):
    S = int(nsample)
    N = int(n_points)            # padded to a multiple of 8 by the wrapper
    C = int(n_chan)
    TP = int(p_tile)
    G = int(sel_group)
    CH3 = 3 + C
    SEC = _round_up(CH3, 8)      # sublane-aligned section stride inside the LHS
    r2 = float(radius) * float(radius)   # python float -> literal, no captured consts

    def kernel(xyz_ref, newt_ref, lhs_ref, out_ref):
        f32 = jnp.float32
        xyz = xyz_ref[...]               # (N, 3)   f32 (padded rows pushed far away)
        new_t = newt_ref[...]            # (3, TP)  f32
        lhs_b = lhs_ref[...]             # (2*SEC + 8, N) bf16: [hi | mid | xyz_lo]

        xs = xyz[:, 0:1]
        ys = xyz[:, 1:2]
        zs = xyz[:, 2:3]
        nx = new_t[0:1, :]
        ny = new_t[1:2, :]
        nz = new_t[2:3, :]

        # ---------------- ball query (exact diff form, CUDA `<` semantics) ----
        dx = xs - nx
        dy = ys - ny
        dz = zs - nz
        d2 = dx * dx + dy * dy + dz * dz              # (N, TP)
        mask = d2 < r2
        maskf = mask.astype(f32)

        row_n = jax.lax.broadcasted_iota(jnp.int32, (N, TP), 0)

        # inclusive prefix sum over the sublane axis: log2(N) roll + mask + add
        cs = maskf
        shift = 1
        while shift < N:
            eff = shift if roll_forward else (N - shift)
            rolled = pltpu.roll(cs, eff, axis=0)      # rolled[i] = cs[i - shift mod N]
            cs = cs + jnp.where(row_n >= shift, rolled, 0.0)
            shift *= 2
        count = cs[N - 1:N, :]                        # (1, TP) exact integer in f32

        # fallback one-hot (index 0), active only when the ball is empty; hoisted
        e0 = (row_n == 0).astype(f32)
        empty_fill = jnp.where(count > 0.0, 0.0, e0)  # (N, TP)

        # ---------------- grouping: batched one-hot gather on the MXU ---------
        gxyz_list = [None] * S        # each (3, TP)
        gfeat_list = [None] * S       # each (C, TP)
        for k0 in range(0, S, G):
            ks = list(range(k0, min(k0 + G, S)))
            sels = []
            for k in ks:
                # per-lane clamped target rank: k+1 if count>k else 1 (first hit)
                t_k = jnp.where(count > float(k), float(k + 1), 1.0)        # (1, TP)
                sel = jnp.where(mask & (cs == t_k), 1.0, 0.0) + empty_fill  # (N, TP)
                sels.append(sel.astype(jnp.bfloat16))                       # 0/1 exact
            sel_grp = sels[0] if len(sels) == 1 else jnp.concatenate(sels, axis=1)
            # one matmul per group: hi/mid/lo stacked on the M axis of the LHS
            res = jnp.dot(lhs_b, sel_grp, preferred_element_type=f32)  # (2*SEC+8, g*TP)
            for gi, k in enumerate(ks):
                res_k = res[:, gi * TP:(gi + 1) * TP]
                hm = res_k[0:CH3, :] + res_k[SEC:SEC + CH3, :]          # hi + mid
                gxyz_list[k] = hm[0:3, :] + res_k[2 * SEC:2 * SEC + 3, :]  # + xyz lo
                if C > 0:
                    gfeat_list[k] = hm[3:CH3, :]

        gx = jnp.concatenate([gxyz_list[k][0:1, :] for k in range(S)], axis=0)  # (S,TP)
        gy = jnp.concatenate([gxyz_list[k][1:2, :] for k in range(S)], axis=0)
        gz = jnp.concatenate([gxyz_list[k][2:3, :] for k in range(S)], axis=0)

        # grouped_r and grouped feature rows: store immediately (shrinks live set)
        out_ref[S * S:S * S + S, :] = jnp.sqrt(gx * gx + gy * gy + gz * gz)
        if C > 0:
            for c in range(C):
                out_ref[S * S + S + c * S:S * S + S + (c + 1) * S, :] = (
                    jnp.concatenate([gfeat_list[k][c:c + 1, :] for k in range(S)],
                                    axis=0))

        # ---------------- mean pairwise distance / tip point -------------------
        mean_acc = jnp.zeros((S, TP), dtype=f32)
        for j in range(S):
            ddx = gx - gx[j:j + 1, :]
            ddy = gy - gy[j:j + 1, :]
            ddz = gz - gz[j:j + 1, :]
            mean_acc = mean_acc + jnp.sqrt(ddx * ddx + ddy * ddy + ddz * ddz)
        mean_dis = mean_acc * (1.0 / float(S))        # (S, TP)

        row_s = jax.lax.broadcasted_iota(jnp.int32, (S, TP), 0)
        row_sf = row_s.astype(f32)
        mmax = jnp.max(mean_dis, axis=0, keepdims=True)
        tip_idx = jnp.min(jnp.where(mean_dis == mmax, row_sf, float(S)),
                          axis=0, keepdims=True)                  # first argmax
        tip_oh = (row_sf == tip_idx).astype(f32)                  # (S, TP)
        tip_x = jnp.sum(tip_oh * gx, axis=0, keepdims=True)       # (1, TP)
        tip_y = jnp.sum(tip_oh * gy, axis=0, keepdims=True)
        tip_z = jnp.sum(tip_oh * gz, axis=0, keepdims=True)

        # ---------------- projection vectors (double cross products) ----------
        c1x = ny * gz - nz * gy
        c1y = nz * gx - nx * gz
        c1z = nx * gy - ny * gx
        vx = c1y * nz - c1z * ny
        vy = c1z * nx - c1x * nz
        vz = c1x * ny - c1y * nx
        inv_v = 1.0 / jnp.sqrt(vx * vx + vy * vy + vz * vz)   # no eps (matches torch)
        px = vx * inv_v
        py = vy * inv_v
        pz = vz * inv_v

        inv_nr = 1.0 / (jnp.sqrt(nx * nx + ny * ny + nz * nz) + 1e-8)
        nnx = nx * inv_nr
        nny = ny * inv_nr
        nnz = nz * inv_nr

        t1x = ny * tip_z - nz * tip_y
        t1y = nz * tip_x - nx * tip_z
        t1z = nx * tip_y - ny * tip_x
        tvx = t1y * nz - t1z * ny
        tvy = t1z * nx - t1x * nz
        tvz = t1x * ny - t1y * nx
        inv_t = 1.0 / jnp.sqrt(tvx * tvx + tvy * tvy + tvz * tvz)
        tpx = tvx * inv_t
        tpy = tvy * inv_t
        tpz = tvz * inv_t

        gcx = py * tpz - pz * tpy
        gcy = pz * tpx - px * tpz
        gcz = px * tpy - py * tpx
        sin_ = gcx * nnx + gcy * nny + gcz * nnz      # (S, TP), indexed [j, p]

        # ---------------- rank sort + one-hot scatter, direct row stores -------
        # out rows [j*S + r, p] = (r-th smallest of {||g_i - g_j||}_i) * sin_[j, p]
        for j in range(S):
            ddx = gx - gx[j:j + 1, :]
            ddy = gy - gy[j:j + 1, :]
            ddz = gz - gz[j:j + 1, :]
            dj = jnp.sqrt(ddx * ddx + ddy * ddy + ddz * ddz)            # (S, TP)
            rk = jnp.zeros((S, TP), dtype=jnp.int32)
            for i in range(S):
                v = dj[i:i + 1, :]
                rk = rk + ((v < dj) | ((v == dj) & (i < row_s))).astype(jnp.int32)
            sorted_j = jnp.zeros((S, TP), dtype=f32)
            for i in range(S):
                sorted_j = sorted_j + jnp.where(row_s == rk[i:i + 1, :],
                                                dj[i:i + 1, :], 0.0)
            out_ref[j * S:(j + 1) * S, :] = sorted_j * sin_[j:j + 1, :]

    return kernel


# ----------------------------------------------------------------------------
# Wrapper (layout plumbing + pallas_call)
# ----------------------------------------------------------------------------
def query_and_group_rri(xyz, new_xyz, features, radius, nsample, p_tile=128):
    """Returns the same (B, nsample+1+C, npoint, nsample) tensor as the torch module."""
    xyz = jnp.asarray(xyz, jnp.float32)
    new_xyz = jnp.asarray(new_xyz, jnp.float32)
    B, N, _ = xyz.shape
    P = new_xyz.shape[1]
    S = int(nsample)
    assert N < (1 << 24), "f32 prefix sum requires N < 2^24"

    if features is None:
        C = 0
        feats = None
    else:
        feats = jnp.asarray(features, jnp.float32)
        C = feats.shape[1]
    CH3 = 3 + C
    SEC = _round_up(CH3, 8)
    M_LHS = 2 * SEC + 8

    # ---- pad N to a sublane multiple; padded points sit far outside any ball --
    N_pad = _round_up(N, 8)
    if N_pad != N:
        xyz_q = jnp.concatenate(
            [xyz, jnp.full((B, N_pad - N, 3), 1e9, jnp.float32)], axis=1)
    else:
        xyz_q = xyz

    # ---- gather LHS: hi/mid for all rows + lo for xyz rows, built once in XLA --
    xyz_t = jnp.transpose(xyz, (0, 2, 1))                    # (B, 3, N)
    data = xyz_t if C == 0 else jnp.concatenate([xyz_t, feats], axis=1)
    if N_pad != N:
        data = jnp.pad(data, ((0, 0), (0, 0), (0, N_pad - N)))
    d_hi = data.astype(jnp.bfloat16)
    res1 = data - d_hi.astype(jnp.float32)
    d_mid = res1.astype(jnp.bfloat16)
    res2 = res1 - d_mid.astype(jnp.float32)
    xyz_lo = res2[:, 0:3, :].astype(jnp.bfloat16)
    lhs = jnp.zeros((B, M_LHS, N_pad), jnp.bfloat16)
    lhs = lhs.at[:, 0:CH3, :].set(d_hi)
    lhs = lhs.at[:, SEC:SEC + CH3, :].set(d_mid)
    lhs = lhs.at[:, 2 * SEC:2 * SEC + 3, :].set(xyz_lo)

    # ---- lane tiling: always full 128-lane tiles (lane-dense stores) ----------
    TP = int(p_tile)
    assert TP % 128 == 0
    P_pad = _round_up(P, TP)
    new_t = jnp.transpose(new_xyz, (0, 2, 1))                # (B, 3, P)
    if P_pad != P:
        new_t = jnp.pad(new_t, ((0, 0), (0, 0), (0, P_pad - P)))

    G = max(1, min(S, 512 // TP))            # lane-group size for the gather matmul
    TOT = S * (S + 1 + C)

    kernel = _make_rri_kernel(float(radius), S, N_pad, C, TP, G,
                              _roll_is_forward())

    out = pl.pallas_call(
        kernel,
        out_shape=jax.ShapeDtypeStruct((B, TOT, P_pad), jnp.float32),
        grid=(B, P_pad // TP),
        in_specs=[
            pl.BlockSpec((None, N_pad, 3), lambda b, p: (b, 0, 0)),     # xyz (per batch)
            pl.BlockSpec((None, 3, TP), lambda b, p: (b, 0, p)),        # centers (P tile)
            pl.BlockSpec((None, M_LHS, N_pad), lambda b, p: (b, 0, 0)),  # bf16 gather LHS
        ],
        out_specs=pl.BlockSpec((None, TOT, TP), lambda b, p: (b, 0, p)),
        compiler_params=pltpu.CompilerParams(
            dimension_semantics=("parallel", "parallel"),
            vmem_limit_bytes=48 * 1024 * 1024),
    )(xyz_q, new_t, lhs)

    # kernel row layout:
    #   rows [0, S*S)      : dis_sort, row j*S + r   -> torch [b, r, p, j]
    #   rows [S*S, S*S+S)  : grouped_r, row k        -> torch [b, S, p, k]
    #   rows [S*S+S, ...)  : features, row c*S + k   -> torch [b, S+1+c, p, k]
    dis = out[:, :S * S, :].reshape(B, S, S, P_pad)          # [b, j, r, p]
    dis = jnp.transpose(dis, (0, 2, 3, 1))                   # [b, r, p, j]
    rest = out[:, S * S:, :].reshape(B, 1 + C, S, P_pad)     # [b, ch, k, p]
    rest = jnp.transpose(rest, (0, 1, 3, 2))                 # [b, ch, p, k]
    full = jnp.concatenate([dis, rest], axis=1)              # (B, S+1+C, P_pad, S)
    return full[:, :, :P, :]


# ----------------------------------------------------------------------------
# Pure-JAX reference (mirrors the PyTorch forward) for correctness check
# ----------------------------------------------------------------------------
def reference_rri(xyz, new_xyz, features, radius, nsample):
    B, N, _ = xyz.shape
    P = new_xyz.shape[1]
    S = nsample

    diff = new_xyz[:, :, None, :] - xyz[:, None, :, :]              # (B,P,N,3)
    d2 = jnp.sum(diff * diff, axis=-1)
    mask = d2 < radius * radius
    cs = jnp.cumsum(mask.astype(jnp.int32), axis=-1)
    count = cs[:, :, -1]
    first_idx = jnp.argmax(mask, axis=-1)
    idx_cols = []
    for k in range(S):
        kth = jnp.argmax(mask & (cs == k + 1), axis=-1)
        idx_cols.append(jnp.where(count > k, kth,
                                  jnp.where(count > 0, first_idx, 0)))
    idx = jnp.stack(idx_cols, axis=-1)                              # (B,P,S)

    gathered = jax.vmap(lambda pts, ii: pts[ii])(xyz, idx)          # (B,P,S,3)
    grouped_xyz = jnp.transpose(gathered, (0, 3, 1, 2))             # (B,3,P,S)
    new_xyz_r = jnp.transpose(new_xyz, (0, 2, 1))[..., None]        # (B,3,P,1)

    dgg = grouped_xyz[:, :, :, :, None] - grouped_xyz[:, :, :, None, :]
    dis = jnp.sqrt(jnp.sum(dgg * dgg, axis=1))                      # (B,P,S,S)
    mean_dis = jnp.mean(dis, axis=3)
    tip_idxs = jnp.argmax(mean_dis, axis=2)                         # (B,P)
    tip_pts = jnp.take_along_axis(
        grouped_xyz,
        jnp.broadcast_to(tip_idxs[:, None, :, None], (B, 3, P, 1)),
        axis=3)[..., 0]                                             # (B,3,P)

    new_rep = jnp.broadcast_to(new_xyz_r, grouped_xyz.shape)
    gpv = jnp.cross(jnp.cross(new_rep, grouped_xyz, axis=1), new_rep, axis=1)
    gpv = gpv / jnp.linalg.norm(gpv, axis=1)[:, None]
    new_r = jnp.sqrt(jnp.sum(new_xyz_r * new_xyz_r, axis=1))        # (B,P,1)
    new_norm = new_xyz_r / (new_r[:, None] + 1e-8)
    tpv = jnp.cross(jnp.cross(new_xyz_r[..., 0], tip_pts, axis=1),
                    new_xyz_r[..., 0], axis=1)
    tpv = tpv / jnp.linalg.norm(tpv, axis=1)[:, None]
    gcv = jnp.cross(gpv, jnp.broadcast_to(tpv[..., None], gpv.shape), axis=1)
    sin_ = jnp.sum(gcv * new_norm, axis=1)                          # (B,P,S)

    dis_t = jnp.transpose(dis, (0, 2, 1, 3))                        # (B,S,P,S)
    dis_sort = jnp.sort(dis_t, axis=1) * sin_[:, None]
    grouped_r = jnp.sqrt(jnp.sum(grouped_xyz * grouped_xyz, axis=1))
    grouped_rri = jnp.concatenate([dis_sort, grouped_r[:, None]], axis=1)
    gfeat = jax.vmap(lambda f, ii: f[:, ii])(features, idx)         # (B,C,P,S)
    return jnp.concatenate([grouped_rri, gfeat], axis=1)


if __name__ == "__main__":
    key = jax.random.PRNGKey(0)
    B, N, P, S, C = 2, 32, 16, 8, 4
    radius = 1.2
    k1, k2, k3 = jax.random.split(key, 3)
    xyz = jax.random.normal(k1, (B, N, 3), dtype=jnp.float32)
    new_xyz = 0.5 * jax.random.normal(k2, (B, P, 3), dtype=jnp.float32)
    features = jax.random.normal(k3, (B, C, N), dtype=jnp.float32)

    out = query_and_group_rri(xyz, new_xyz, features, radius, S)
    out = jax.block_until_ready(out)

    ref = reference_rri(xyz, new_xyz, features, radius, S)
    assert out.shape == (B, S + 1 + C, P, S), out.shape
    max_err = float(jnp.nanmax(jnp.abs(out - ref)))
    assert bool(jnp.allclose(out, ref, rtol=2e-3, atol=2e-3, equal_nan=True)), (
        "max abs err", max_err)

    print("KERNEL_OK")
</pallas_src>

<mosaic_0001>
module attributes {stable_mosaic.version = 11 : i64} {
  func.func @probe(%arg0: memref<8x128xf32, #tpu.memory_space<vmem>>, %arg1: memref<8x128xf32, #tpu.memory_space<vmem>>) attributes {dimension_semantics = [], scalar_prefetch = 0 : i64, scratch_operands = 0 : i64, tpu.core_type = #tpu.core_type<tc>} {
    %c0 = arith.constant 0 : index
    %c0_0 = arith.constant 0 : index
    %0 = vector.load %arg0[%c0, %c0_0] : memref<8x128xf32, #tpu.memory_space<vmem>>, vector<8x128xf32>
    %c1_i32 = arith.constant 1 : i32
    %1 = tpu.dynamic_rotate %0 by %c1_i32 dim 0 : vector<8x128xf32>, i32 -> vector<8x128xf32>
    %c0_1 = arith.constant 0 : index
    %c0_2 = arith.constant 0 : index
    %2 = vector.load %arg1[%c0_1, %c0_2] : memref<8x128xf32, #tpu.memory_space<vmem>>, vector<8x128xf32>
    tpu.vector_store %arg1[%c0_1, %c0_2], %1 {strides = array<i32>} : memref<8x128xf32, #tpu.memory_space<vmem>>, vector<8x128xf32>,
    return
  }
}

</mosaic_0001>

<bundles_post_ra>
// kernel: tpu_custom_call.1
= control target key start
LH: loop header
LB: loop body
LE: loop exit
PB: predicated region body
PF: predicated region fallthrough
CT: control target
= control target key end

     0   :  { %6 = vsyncpa [#allocation3], 0  ;;  %s115_s0 = inlined_call_operand.hbm [shape: f32[8,128], index: 0, kind: input, shape index: {}]   ;;  %s116_s1 = inlined_call_operand.hbm [shape: f32[8,128], index: 1, kind: output, shape index: {}]  }
   0x1   :  { %7 = vsyncpa [#allocation4], 0  ;;  %s13_s8 = sshll.u32 %s115_s0, 4  ;;  %s97_s9 = smov [#allocation2]   ;;  %s14_s8 = int_to_ptr.hbm [resolvable:$true] %s13_s8 }
   0x2   :  { %s15_s10 = sshll.u32 %s97_s9, 4  ;;  %s16_s10 = int_to_ptr.vmem [resolvable:$true] %s15_s10 }
   0x3   :  { %18 = dma.hbm_to_vmem [thread:$0]  %s14_s8, 128, %s16_s10, [#allocation3]  }
   0x4   :  { %93 = dma.done.wait [#allocation3], 128  }
   0x5   :  { %94 = vsyncadd [#allocation3], 4294967168  ;;  %s98_s11 = smov [#allocation5]   ;;  %s33_s15 = sshll.u32 %s116_s1, 4  ;;  %v23_v0 = vld [vmem:[#allocation2] sm:$0xff]  ;;  %s34_s15 = int_to_ptr.hbm [resolvable:$true] %s33_s15 }
   0x6   :  { %s31_s12 = sshll.u32 %s98_s11, 4  ;;  %v24_v1 = vrot.slane %v23_v0, 7  ;;  %s32_s12 = int_to_ptr.vmem [resolvable:$true] %s31_s12 }
   0x8   :  { %25 = vst [vmem:[#allocation5] sm:$0xff] %v24_v1 }
   0x9   :  { %36 = dma.vmem_to_hbm [thread:$0]  %s32_s12, 128, %s34_s15, [#allocation4]  }
   0xa   :  { %95 = dma.done.wait [#allocation4], 128  }
   0xb   :  { %96 = vsyncadd [#allocation4], 4294967168 }
   0xc   :  { %41 = vsyncpa [#allocation3], 1 }
   0xd   :  { %42 = vsyncpa [#allocation4], 1 }

</bundles_post_ra>
